<compile_context>
chip_gen: v7x
topology: tpu7x:2x2x1
jax: 0.10.0
libtpu: 0.0.40
codegen_flags: <defaults>
</compile_context>

<pallas_src>
import functools
import math

import jax
import jax.numpy as jnp
from jax.experimental import pallas as pl
from jax.experimental.pallas import tpu as pltpu


# --------------------------------------------------------------------------
# Tiling helpers
# --------------------------------------------------------------------------
def _pick_tile(dim, target):
    """Largest tile <= target that divides dim (falls back to the full dim)."""
    if dim <= target:
        return dim
    t = target
    while t >= 8:
        if dim % t == 0:
            return t
        t //= 2
    return dim


def _heads_per_group(num_heads, head_dim):
    """Smallest #heads per grid step whose combined lane width is 128-aligned."""
    for hpb in range(1, num_heads + 1):
        if num_heads % hpb == 0 and (hpb * head_dim) % 128 == 0:
            return hpb
    return num_heads   # E < 128: a single group spanning the full E axis


# --------------------------------------------------------------------------
# K-tiled linear projection kernel: y = x @ w^T + b
# --------------------------------------------------------------------------
def _linear_kernel(x_ref, w_ref, b_ref, o_ref, acc_ref):
    @pl.when(pl.program_id(2) == 0)
    def _():
        acc_ref[...] = jnp.zeros_like(acc_ref)

    x = x_ref[...]                       # (tm, tk)
    w = w_ref[...]                       # (tn, tk)  -- PyTorch (Dout, Din) layout
    if x.dtype != w.dtype:               # mixed-precision inputs: promote in-kernel
        ct = jnp.promote_types(x.dtype, w.dtype)
        x = x.astype(ct)
        w = w.astype(ct)
    acc_ref[...] += jax.lax.dot_general(x, w, (((1,), (1,)), ((), ())),
                                        preferred_element_type=jnp.float32)

    @pl.when(pl.program_id(2) == pl.num_programs(2) - 1)
    def _():
        o_ref[...] = (acc_ref[...] + b_ref[...]).astype(o_ref.dtype)


def pallas_linear(x, w, b, *, tm=256, tn=512, tk=512, out_dtype=None):
    """x: (M, Din), w: (Dout, Din), b: (Dout,) -> (M, Dout)."""
    M, Din = x.shape
    Dout = w.shape[0]
    tm = _pick_tile(M, tm)
    tn = _pick_tile(Dout, tn)       # tn large => activations (usually the larger
    tk = _pick_tile(Din, tk)        # operand, M = b*n rows) are re-streamed least
    if out_dtype is None:
        out_dtype = jnp.result_type(x.dtype, w.dtype)
    b2 = b.reshape(1, Dout)

    grid = (M // tm, Dout // tn, Din // tk)
    flops = 2 * M * Din * Dout
    bytes_accessed = (x.size * (Dout // tn) + w.size * (M // tm) + b.size
                      + M * Dout) * x.dtype.itemsize   # advisory only

    return pl.pallas_call(
        _linear_kernel,
        out_shape=jax.ShapeDtypeStruct((M, Dout), out_dtype),
        grid=grid,
        in_specs=[
            pl.BlockSpec((tm, tk), lambda i, j, k: (i, k)),
            pl.BlockSpec((tn, tk), lambda i, j, k: (j, k)),
            pl.BlockSpec((1, tn), lambda i, j, k: (0, j)),
        ],
        out_specs=pl.BlockSpec((tm, tn), lambda i, j, k: (i, j)),
        scratch_shapes=[pltpu.VMEM((tm, tn), jnp.float32)],
        compiler_params=pltpu.CompilerParams(
            dimension_semantics=("parallel", "parallel", "arbitrary")),
        cost_estimate=pl.CostEstimate(flops=flops, transcendentals=0,
                                      bytes_accessed=bytes_accessed),
    )(x, w, b2)


# --------------------------------------------------------------------------
# Attention core kernel: one (batch, head-group, q-tile) per grid step
# --------------------------------------------------------------------------
def _attn_kernel(q_ref, k_ref, v_ref, pe1_ref, pe2_ref, o_ref, *,
                 heads_per_group, head_dim):
    scale = 1.0 / math.sqrt(head_dim)

    # Relative-PE scores: tiny (contraction 8, zero-padded from 3), computed once
    # per grid step from the resident pe1/pe2 blocks, shared across the group.
    pe = jax.lax.dot_general(pe1_ref[0], pe2_ref[...], (((1,), (1,)), ((), ())),
                             preferred_element_type=jnp.float32) * scale   # (tq, l)

    for h in range(heads_per_group):       # small static loop (1-2 heads typical)
        lo = h * head_dim
        hi = lo + head_dim
        qh = q_ref[0, :, lo:hi] * scale    # (tq, d)  scale folded into q
        kh = k_ref[0, :, lo:hi]            # (l,  d)
        vh = v_ref[0, :, lo:hi]            # (l,  d)

        s = jax.lax.dot_general(qh, kh, (((1,), (1,)), ((), ())),
                                preferred_element_type=jnp.float32)        # (tq, l)
        s = s + pe
        s = s - jnp.max(s, axis=-1, keepdims=True)
        p = jnp.exp(s)
        p = p * pl.reciprocal(jnp.sum(p, axis=-1, keepdims=True), approx=True)
        oh = jnp.dot(p.astype(vh.dtype), vh,
                     preferred_element_type=jnp.float32)                   # (tq, d)

        # Store immediately: bounded live range, no concat, no spill.
        o_ref[0, :, lo:hi] = oh.astype(o_ref.dtype)


def pallas_attention(qp, kp, vp, pe1p, pe2p, num_heads, *, out_dtype=None, tq=256):
    """qp/kp/vp: (b, seq, E) batch-major projections; pe1p: (b, n, Cp); pe2p: (l, Cp)."""
    b, n, E = qp.shape
    l = kp.shape[1]
    d = E // num_heads
    cp = pe2p.shape[-1]
    if out_dtype is None:
        out_dtype = qp.dtype

    hpb = _heads_per_group(num_heads, d)   # lane-aligned group (dg % 128 == 0 or dg == E)
    n_groups = num_heads // hpb
    dg = hpb * d
    tq = _pick_tile(n, tq)
    nq = n // tq

    kernel = functools.partial(_attn_kernel, heads_per_group=hpb, head_dim=d)

    flops = 4 * b * num_heads * n * l * d + 2 * b * n_groups * n * l * cp
    transcendentals = b * num_heads * n * l
    bytes_accessed = (qp.size + kp.size + vp.size + b * n * E) * qp.dtype.itemsize \
        + (pe1p.size + pe2p.size) * 4

    # Grid order: q-tile innermost so the (l, dg) k/v blocks (largest operands)
    # stay resident in VMEM across q-tiles; q / out / pe1 blocks stream once.
    # TODO(synk): add a KV grid axis with flash-style online softmax for long l.
    return pl.pallas_call(
        kernel,
        out_shape=jax.ShapeDtypeStruct((b, n, E), out_dtype),
        grid=(b, n_groups, nq),
        in_specs=[
            pl.BlockSpec((1, tq, dg), lambda bi, hi, qi: (bi, qi, hi)),
            pl.BlockSpec((1, l, dg), lambda bi, hi, qi: (bi, 0, hi)),
            pl.BlockSpec((1, l, dg), lambda bi, hi, qi: (bi, 0, hi)),
            pl.BlockSpec((1, tq, cp), lambda bi, hi, qi: (bi, qi, 0)),
            pl.BlockSpec((l, cp), lambda bi, hi, qi: (0, 0)),
        ],
        out_specs=pl.BlockSpec((1, tq, dg), lambda bi, hi, qi: (bi, qi, hi)),
        compiler_params=pltpu.CompilerParams(
            dimension_semantics=("parallel", "parallel", "parallel")),
        cost_estimate=pl.CostEstimate(flops=flops, transcendentals=transcendentals,
                                      bytes_accessed=bytes_accessed),
    )(qp, kp, vp, pe1p, pe2p)


# --------------------------------------------------------------------------
# Full forward pass
# --------------------------------------------------------------------------
def multihead_attention_relpe(q, k, v, pe1, pe2, params, num_heads, attn_dtype=None):
    n, b, E = q.shape
    l = k.shape[0]

    # Batch-major layout once, on the *raw* (narrow) inputs.  After this there
    # are no XLA transposes of the wider projected tensors.
    qb = jnp.transpose(q, (1, 0, 2)).reshape(b * n, -1)    # (b*n, E)
    kb = jnp.transpose(k, (1, 0, 2)).reshape(b * l, -1)    # (b*l, kdim)
    vb = jnp.transpose(v, (1, 0, 2)).reshape(b * l, -1)    # (b*l, vdim)

    # Separate projection calls (no jnp.stack => no extra HBM round trip).
    qp = pallas_linear(qb, params["wq"], params["bq"]).reshape(b, n, E)
    kp = pallas_linear(kb, params["wk"], params["bk"]).reshape(b, l, E)
    vp = pallas_linear(vb, params["wv"], params["bv"]).reshape(b, l, E)

    if attn_dtype is not None:   # bf16 on v6e/v7x: 2x MXU, half the VMEM/HBM bytes
        qp = qp.astype(attn_dtype)
        kp = kp.astype(attn_dtype)
        vp = vp.astype(attn_dtype)

    # Zero-pad the tiny PE coordinate axis (3 -> 8) so the in-kernel PE matmul
    # has an aligned contraction dim; zeros do not change the result.
    pad_c = (-pe1.shape[-1]) % 8
    pe1p = jnp.pad(pe1, ((0, 0), (0, 0), (0, pad_c))).astype(jnp.float32)
    pe2p = jnp.pad(pe2, ((0, 0), (0, pad_c))).astype(jnp.float32)

    oh = pallas_attention(qp, kp, vp, pe1p, pe2p, num_heads)     # (b, n, E)

    out = pallas_linear(oh.reshape(b * n, E), params["wo"], params["bo"])
    out = out.reshape(b, n, E)
    return jnp.transpose(out, (1, 0, 2))                         # required (n, b, E)


# --------------------------------------------------------------------------
# Plain-JAX reference (mirrors the PyTorch forward) for verification
# --------------------------------------------------------------------------
def reference(q, k, v, pe1, pe2, params, num_heads):
    n, b, E = q.shape
    l = k.shape[0]
    head_dim = E // num_heads
    lin = lambda x, w, bb: x @ w.T + bb
    qp = lin(q, params["wq"], params["bq"])
    kp = lin(k, params["wk"], params["bk"])
    vp = lin(v, params["wv"], params["bv"])
    qh = qp.reshape(n, b, num_heads, head_dim).transpose(1, 2, 0, 3).reshape(b * num_heads, n, head_dim)
    kh = kp.reshape(l, b, num_heads, head_dim).transpose(1, 2, 0, 3).reshape(b * num_heads, l, head_dim)
    vh = vp.reshape(l, b, num_heads, head_dim).transpose(1, 2, 0, 3).reshape(b * num_heads, l, head_dim)
    pe = pe1 @ pe2.T                                                 # (b, n, l)
    pe = jnp.repeat(pe[:, None], num_heads, axis=1).reshape(b * num_heads, n, l)
    attn = (jnp.einsum("bnd,bld->bnl", qh, kh) + pe) / math.sqrt(head_dim)
    attn = jax.nn.softmax(attn, axis=-1)
    oh = jnp.einsum("bnl,bld->bnd", attn, vh)
    o = oh.reshape(b, num_heads, n, head_dim).transpose(2, 0, 1, 3).reshape(n, b, E)
    return lin(o, params["wo"], params["bo"])


if __name__ == "__main__":
    embed_dim, kdim, vdim, num_heads = 32, 16, 16, 4
    n, l, b = 8, 8, 2

    key = jax.random.PRNGKey(0)
    ks = jax.random.split(key, 16)

    def init_linear(kw, kb, out_dim, in_dim):
        bound = 1.0 / math.sqrt(in_dim)
        w = jax.random.uniform(kw, (out_dim, in_dim), jnp.float32, -bound, bound)
        bb = jax.random.uniform(kb, (out_dim,), jnp.float32, -bound, bound)
        return w, bb

    wq, bq = init_linear(ks[0], ks[1], embed_dim, embed_dim)
    wk, bk = init_linear(ks[2], ks[3], embed_dim, kdim)
    wv, bv = init_linear(ks[4], ks[5], embed_dim, vdim)
    wo, bo = init_linear(ks[6], ks[7], embed_dim, embed_dim)
    params = dict(wq=wq, bq=bq, wk=wk, bk=bk, wv=wv, bv=bv, wo=wo, bo=bo)

    q = jax.random.normal(ks[8], (n, b, embed_dim), jnp.float32)
    k = jax.random.normal(ks[9], (l, b, kdim), jnp.float32)
    v = jax.random.normal(ks[10], (l, b, vdim), jnp.float32)
    pe1 = jax.random.normal(ks[11], (b, n, 3), jnp.float32)
    pe2 = jax.random.normal(ks[12], (l, 3), jnp.float32)

    ref = reference(q, k, v, pe1, pe2, params, num_heads)

    # f32 path: tight check (tolerance absorbs the deliberate EUP approximate
    # reciprocal in the softmax normalization, ~1e-3 relative).
    fwd = jax.jit(lambda q, k, v, pe1, pe2, params:
                  multihead_attention_relpe(q, k, v, pe1, pe2, params, num_heads))
    out = jax.block_until_ready(fwd(q, k, v, pe1, pe2, params))
    assert out.shape == (n, b, embed_dim)
    assert jnp.allclose(out, ref, atol=1e-2, rtol=1e-2), "f32 mismatch vs reference"

    # bf16 attention-operand path (the v6e/v7x production configuration): loose check.
    fwd_bf16 = jax.jit(lambda q, k, v, pe1, pe2, params:
                       multihead_attention_relpe(q, k, v, pe1, pe2, params, num_heads,
                                                 attn_dtype=jnp.bfloat16))
    out_bf16 = jax.block_until_ready(fwd_bf16(q, k, v, pe1, pe2, params))
    assert out_bf16.shape == (n, b, embed_dim)
    assert jnp.allclose(out_bf16.astype(jnp.float32), ref, atol=1e-1, rtol=1e-1), \
        "bf16 mismatch vs reference"

    print("KERNEL_OK")
</pallas_src>

<mosaic_0001>
module attributes {stable_mosaic.version = 11 : i64} {
  func.func @_linear_kernel(%arg0: i32, %arg1: i32, %arg2: i32, %arg3: memref<16x16xf32, #tpu.memory_space<vmem>>, %arg4: memref<32x16xf32, #tpu.memory_space<vmem>>, %arg5: memref<1x32xf32, #tpu.memory_space<vmem>>, %arg6: memref<16x32xf32, #tpu.memory_space<vmem>>, %arg7: memref<16x32xf32, #tpu.memory_space<vmem>>) attributes {dimension_semantics = [#tpu.dimension_semantics<parallel>, #tpu.dimension_semantics<parallel>, #tpu.dimension_semantics<arbitrary>], iteration_bounds = array<i64: 1, 1, 1>, scalar_prefetch = 0 : i64, scratch_operands = 1 : i64, tpu.core_type = #tpu.core_type<tc>, window_params = [{transform_indices = @transform_0, window_bounds = array<i64: 16, 16>}, {transform_indices = @transform_1, window_bounds = array<i64: 32, 16>}, {transform_indices = @transform_2, window_bounds = array<i64: 1, 32>}, {transform_indices = @transform_3, window_bounds = array<i64: 16, 32>}]} {
    %c0_i32 = arith.constant 0 : i32
    %0 = arith.cmpi eq, %arg2, %c0_i32 : i32
    %1 = arith.extui %0 : i1 to i32
    %c0_i32_0 = arith.constant 0 : i32
    %2 = arith.cmpi ne, %1, %c0_i32_0 : i32
    scf.if %2 {
      %cst_10 = arith.constant 0.000000e+00 : f32
      %12 = vector.broadcast %cst_10 : f32 to vector<16x32xf32>
      %c0_11 = arith.constant 0 : index
      %c0_12 = arith.constant 0 : index
      %13 = vector.load %arg7[%c0_11, %c0_12] : memref<16x32xf32, #tpu.memory_space<vmem>>, vector<16x32xf32>
      tpu.vector_store %arg7[%c0_11, %c0_12], %12 {strides = array<i32>} : memref<16x32xf32, #tpu.memory_space<vmem>>, vector<16x32xf32>,
    } else {
    }
    %c0 = arith.constant 0 : index
    %c0_1 = arith.constant 0 : index
    %3 = vector.load %arg3[%c0, %c0_1] : memref<16x16xf32, #tpu.memory_space<vmem>>, vector<16x16xf32>
    %c0_2 = arith.constant 0 : index
    %c0_3 = arith.constant 0 : index
    %4 = vector.load %arg4[%c0_2, %c0_3] : memref<32x16xf32, #tpu.memory_space<vmem>>, vector<32x16xf32>
    %c0_4 = arith.constant 0 : index
    %c0_5 = arith.constant 0 : index
    %5 = vector.load %arg7[%c0_4, %c0_5] : memref<16x32xf32, #tpu.memory_space<vmem>>, vector<16x32xf32>
    %cst = arith.constant dense<0.000000e+00> : vector<16x32xf32>
    %6 = tpu.matmul %3, %4, %cst {dimension_numbers = #tpu.dot_dimension_numbers<[1], [1], [0], [0], [0, 0, 1, 0], [], []>} : vector<16x16xf32>, vector<32x16xf32>, vector<16x32xf32> -> vector<16x32xf32>
    %7 = arith.addf %5, %6 : vector<16x32xf32>
    %c0_6 = arith.constant 0 : index
    %c0_7 = arith.constant 0 : index
    %8 = vector.load %arg7[%c0_6, %c0_7] : memref<16x32xf32, #tpu.memory_space<vmem>>, vector<16x32xf32>
    tpu.vector_store %arg7[%c0_6, %c0_7], %7 {strides = array<i32>} : memref<16x32xf32, #tpu.memory_space<vmem>>, vector<16x32xf32>,
    %c0_i32_8 = arith.constant 0 : i32
    %9 = arith.cmpi eq, %arg2, %c0_i32_8 : i32
    %10 = arith.extui %9 : i1 to i32
    %c0_i32_9 = arith.constant 0 : i32
    %11 = arith.cmpi ne, %10, %c0_i32_9 : i32
    scf.if %11 {
      %c0_10 = arith.constant 0 : index
      %c0_11 = arith.constant 0 : index
      %12 = vector.load %arg7[%c0_10, %c0_11] : memref<16x32xf32, #tpu.memory_space<vmem>>, vector<16x32xf32>
      %c0_12 = arith.constant 0 : index
      %c0_13 = arith.constant 0 : index
      %13 = vector.load %arg5[%c0_12, %c0_13] : memref<1x32xf32, #tpu.memory_space<vmem>>, vector<1x32xf32>
      %14 = vector.broadcast %13 : vector<1x32xf32> to vector<16x32xf32>
      %15 = arith.addf %12, %14 : vector<16x32xf32>
      %c0_14 = arith.constant 0 : index
      %c0_15 = arith.constant 0 : index
      %16 = vector.load %arg6[%c0_14, %c0_15] : memref<16x32xf32, #tpu.memory_space<vmem>>, vector<16x32xf32>
      tpu.vector_store %arg6[%c0_14, %c0_15], %15 {strides = array<i32>} : memref<16x32xf32, #tpu.memory_space<vmem>>, vector<16x32xf32>,
    } else {
    }
    return
  }
  func.func @transform_0(%arg0: i32, %arg1: i32, %arg2: i32) -> (i32, i32) {
    %c0_i32 = arith.constant 0 : i32
    return %arg0, %arg2 : i32, i32
  }
  func.func @transform_1(%arg0: i32, %arg1: i32, %arg2: i32) -> (i32, i32) {
    %c0_i32 = arith.constant 0 : i32
    return %arg1, %arg2 : i32, i32
  }
  func.func @transform_2(%arg0: i32, %arg1: i32, %arg2: i32) -> (i32, i32) {
    %c0_i32 = arith.constant 0 : i32
    %c0_i32_0 = arith.constant 0 : i32
    return %c0_i32, %arg1 : i32, i32
  }
  func.func @transform_3(%arg0: i32, %arg1: i32, %arg2: i32) -> (i32, i32) {
    %c0_i32 = arith.constant 0 : i32
    return %arg0, %arg1 : i32, i32
  }
}

module attributes {stable_mosaic.version = 11 : i64} {
  func.func @_linear_kernel(%arg0: i32, %arg1: i32, %arg2: i32, %arg3: memref<16x32xf32, #tpu.memory_space<vmem>>, %arg4: memref<32x32xf32, #tpu.memory_space<vmem>>, %arg5: memref<1x32xf32, #tpu.memory_space<vmem>>, %arg6: memref<16x32xf32, #tpu.memory_space<vmem>>, %arg7: memref<16x32xf32, #tpu.memory_space<vmem>>) attributes {dimension_semantics = [#tpu.dimension_semantics<parallel>, #tpu.dimension_semantics<parallel>, #tpu.dimension_semantics<arbitrary>], iteration_bounds = array<i64: 1, 1, 1>, scalar_prefetch = 0 : i64, scratch_operands = 1 : i64, tpu.core_type = #tpu.core_type<tc>, window_params = [{transform_indices = @transform_0, window_bounds = array<i64: 16, 32>}, {transform_indices = @transform_1, window_bounds = array<i64: 32, 32>}, {transform_indices = @transform_2, window_bounds = array<i64: 1, 32>}, {transform_indices = @transform_3, window_bounds = array<i64: 16, 32>}]} {
    %c0_i32 = arith.constant 0 : i32
    %0 = arith.cmpi eq, %arg2, %c0_i32 : i32
    %1 = arith.extui %0 : i1 to i32
    %c0_i32_0 = arith.constant 0 : i32
    %2 = arith.cmpi ne, %1, %c0_i32_0 : i32
    scf.if %2 {
      %cst_10 = arith.constant 0.000000e+00 : f32
      %12 = vector.broadcast %cst_10 : f32 to vector<16x32xf32>
      %c0_11 = arith.constant 0 : index
      %c0_12 = arith.constant 0 : index
      %13 = vector.load %arg7[%c0_11, %c0_12] : memref<16x32xf32, #tpu.memory_space<vmem>>, vector<16x32xf32>
      tpu.vector_store %arg7[%c0_11, %c0_12], %12 {strides = array<i32>} : memref<16x32xf32, #tpu.memory_space<vmem>>, vector<16x32xf32>,
    } else {
    }
    %c0 = arith.constant 0 : index
    %c0_1 = arith.constant 0 : index
    %3 = vector.load %arg3[%c0, %c0_1] : memref<16x32xf32, #tpu.memory_space<vmem>>, vector<16x32xf32>
    %c0_2 = arith.constant 0 : index
    %c0_3 = arith.constant 0 : index
    %4 = vector.load %arg4[%c0_2, %c0_3] : memref<32x32xf32, #tpu.memory_space<vmem>>, vector<32x32xf32>
    %c0_4 = arith.constant 0 : index
    %c0_5 = arith.constant 0 : index
    %5 = vector.load %arg7[%c0_4, %c0_5] : memref<16x32xf32, #tpu.memory_space<vmem>>, vector<16x32xf32>
    %cst = arith.constant dense<0.000000e+00> : vector<16x32xf32>
    %6 = tpu.matmul %3, %4, %cst {dimension_numbers = #tpu.dot_dimension_numbers<[1], [1], [0], [0], [0, 0, 1, 0], [], []>} : vector<16x32xf32>, vector<32x32xf32>, vector<16x32xf32> -> vector<16x32xf32>
    %7 = arith.addf %5, %6 : vector<16x32xf32>
    %c0_6 = arith.constant 0 : index
    %c0_7 = arith.constant 0 : index
    %8 = vector.load %arg7[%c0_6, %c0_7] : memref<16x32xf32, #tpu.memory_space<vmem>>, vector<16x32xf32>
    tpu.vector_store %arg7[%c0_6, %c0_7], %7 {strides = array<i32>} : memref<16x32xf32, #tpu.memory_space<vmem>>, vector<16x32xf32>,
    %c0_i32_8 = arith.constant 0 : i32
    %9 = arith.cmpi eq, %arg2, %c0_i32_8 : i32
    %10 = arith.extui %9 : i1 to i32
    %c0_i32_9 = arith.constant 0 : i32
    %11 = arith.cmpi ne, %10, %c0_i32_9 : i32
    scf.if %11 {
      %c0_10 = arith.constant 0 : index
      %c0_11 = arith.constant 0 : index
      %12 = vector.load %arg7[%c0_10, %c0_11] : memref<16x32xf32, #tpu.memory_space<vmem>>, vector<16x32xf32>
      %c0_12 = arith.constant 0 : index
      %c0_13 = arith.constant 0 : index
      %13 = vector.load %arg5[%c0_12, %c0_13] : memref<1x32xf32, #tpu.memory_space<vmem>>, vector<1x32xf32>
      %14 = vector.broadcast %13 : vector<1x32xf32> to vector<16x32xf32>
      %15 = arith.addf %12, %14 : vector<16x32xf32>
      %c0_14 = arith.constant 0 : index
      %c0_15 = arith.constant 0 : index
      %16 = vector.load %arg6[%c0_14, %c0_15] : memref<16x32xf32, #tpu.memory_space<vmem>>, vector<16x32xf32>
      tpu.vector_store %arg6[%c0_14, %c0_15], %15 {strides = array<i32>} : memref<16x32xf32, #tpu.memory_space<vmem>>, vector<16x32xf32>,
    } else {
    }
    return
  }
  func.func @transform_0(%arg0: i32, %arg1: i32, %arg2: i32) -> (i32, i32) {
    %c0_i32 = arith.constant 0 : i32
    return %arg0, %arg2 : i32, i32
  }
  func.func @transform_1(%arg0: i32, %arg1: i32, %arg2: i32) -> (i32, i32) {
    %c0_i32 = arith.constant 0 : i32
    return %arg1, %arg2 : i32, i32
  }
  func.func @transform_2(%arg0: i32, %arg1: i32, %arg2: i32) -> (i32, i32) {
    %c0_i32 = arith.constant 0 : i32
    %c0_i32_0 = arith.constant 0 : i32
    return %c0_i32, %arg1 : i32, i32
  }
  func.func @transform_3(%arg0: i32, %arg1: i32, %arg2: i32) -> (i32, i32) {
    %c0_i32 = arith.constant 0 : i32
    return %arg0, %arg1 : i32, i32
  }
}

module attributes {stable_mosaic.version = 11 : i64} {
  func.func @_attn_kernel(%arg0: i32, %arg1: i32, %arg2: i32, %arg3: memref<1x8x32xf32, #tpu.memory_space<vmem>>, %arg4: memref<1x8x32xf32, #tpu.memory_space<vmem>>, %arg5: memref<1x8x32xf32, #tpu.memory_space<vmem>>, %arg6: memref<1x8x8xf32, #tpu.memory_space<vmem>>, %arg7: memref<8x8xf32, #tpu.memory_space<vmem>>, %arg8: memref<1x8x32xf32, #tpu.memory_space<vmem>>) attributes {dimension_semantics = [#tpu.dimension_semantics<parallel>, #tpu.dimension_semantics<parallel>, #tpu.dimension_semantics<parallel>], iteration_bounds = array<i64: 2, 1, 1>, scalar_prefetch = 0 : i64, scratch_operands = 0 : i64, tpu.core_type = #tpu.core_type<tc>, window_params = [{transform_indices = @transform_0, window_bounds = array<i64: 1, 8, 32>}, {transform_indices = @transform_1, window_bounds = array<i64: 1, 8, 32>}, {transform_indices = @transform_2, window_bounds = array<i64: 1, 8, 32>}, {transform_indices = @transform_3, window_bounds = array<i64: 1, 8, 8>}, {pipeline_mode = #tpu.pipeline_mode<synchronous>, transform_indices = @transform_4, window_bounds = array<i64: 8, 8>}, {transform_indices = @transform_5, window_bounds = array<i64: 1, 8, 32>}]} {
    %c0 = arith.constant 0 : index
    %c0_0 = arith.constant 0 : index
    %c0_1 = arith.constant 0 : index
    %0 = vector.load %arg6[%c0, %c0_0, %c0_1] : memref<1x8x8xf32, #tpu.memory_space<vmem>>, vector<1x8x8xf32>
    %1 = vector.shape_cast %0 : vector<1x8x8xf32> to vector<8x8xf32>
    %c0_2 = arith.constant 0 : index
    %c0_3 = arith.constant 0 : index
    %2 = vector.load %arg7[%c0_2, %c0_3] : memref<8x8xf32, #tpu.memory_space<vmem>>, vector<8x8xf32>
    %cst = arith.constant dense<0.000000e+00> : vector<8x8xf32>
    %3 = tpu.matmul %1, %2, %cst {dimension_numbers = #tpu.dot_dimension_numbers<[1], [1], [0], [0], [0, 0, 1, 0], [], []>} : vector<8x8xf32>, vector<8x8xf32>, vector<8x8xf32> -> vector<8x8xf32>
    %cst_4 = arith.constant 0.353553385 : f32
    %4 = vector.broadcast %cst_4 : f32 to vector<8x8xf32>
    %5 = arith.mulf %3, %4 : vector<8x8xf32>
    %c0_5 = arith.constant 0 : index
    %c0_6 = arith.constant 0 : index
    %c0_7 = arith.constant 0 : index
    %6 = vector.load %arg3[%c0_5, %c0_6, %c0_7] : memref<1x8x32xf32, #tpu.memory_space<vmem>>, vector<1x8x8xf32>
    %7 = vector.shape_cast %6 : vector<1x8x8xf32> to vector<8x8xf32>
    %cst_8 = arith.constant 0.353553385 : f32
    %8 = vector.broadcast %cst_8 : f32 to vector<8x8xf32>
    %9 = arith.mulf %7, %8 : vector<8x8xf32>
    %c0_9 = arith.constant 0 : index
    %c0_10 = arith.constant 0 : index
    %c0_11 = arith.constant 0 : index
    %10 = vector.load %arg4[%c0_9, %c0_10, %c0_11] : memref<1x8x32xf32, #tpu.memory_space<vmem>>, vector<1x8x8xf32>
    %11 = vector.shape_cast %10 : vector<1x8x8xf32> to vector<8x8xf32>
    %c0_12 = arith.constant 0 : index
    %c0_13 = arith.constant 0 : index
    %c0_14 = arith.constant 0 : index
    %12 = vector.load %arg5[%c0_12, %c0_13, %c0_14] : memref<1x8x32xf32, #tpu.memory_space<vmem>>, vector<1x8x8xf32>
    %13 = vector.shape_cast %12 : vector<1x8x8xf32> to vector<8x8xf32>
    %cst_15 = arith.constant dense<0.000000e+00> : vector<8x8xf32>
    %14 = tpu.matmul %9, %11, %cst_15 {dimension_numbers = #tpu.dot_dimension_numbers<[1], [1], [0], [0], [0, 0, 1, 0], [], []>} : vector<8x8xf32>, vector<8x8xf32>, vector<8x8xf32> -> vector<8x8xf32>
    %15 = arith.addf %14, %5 : vector<8x8xf32>
    %cst_16 = arith.constant dense<0xFF800000> : vector<8xf32>
    %16 = vector.multi_reduction <maximumf>, %15, %cst_16 [1] : vector<8x8xf32> to vector<8xf32>
    %17 = vector.shape_cast %16 : vector<8xf32> to vector<8x1xf32>
    %18 = vector.broadcast %17 : vector<8x1xf32> to vector<8x8xf32>
    %19 = arith.subf %15, %18 : vector<8x8xf32>
    %20 = math.exp %19 : vector<8x8xf32>
    %cst_17 = arith.constant dense<0.000000e+00> : vector<8xf32>
    %21 = vector.multi_reduction <add>, %20, %cst_17 [1] : vector<8x8xf32> to vector<8xf32>
    %22 = vector.shape_cast %21 : vector<8xf32> to vector<8x1xf32>
    %23 = tpu.reciprocal %22 {approx = true} : vector<8x1xf32> -> vector<8x1xf32>
    %24 = vector.broadcast %23 : vector<8x1xf32> to vector<8x8xf32>
    %25 = arith.mulf %20, %24 : vector<8x8xf32>
    %cst_18 = arith.constant dense<0.000000e+00> : vector<8x8xf32>
    %26 = tpu.matmul %25, %13, %cst_18 {dimension_numbers = #tpu.dot_dimension_numbers<[1], [0], [0], [1], [0, 0, 1, 1], [], []>} : vector<8x8xf32>, vector<8x8xf32>, vector<8x8xf32> -> vector<8x8xf32>
    %c0_19 = arith.constant 0 : index
    %c0_20 = arith.constant 0 : index
    %c0_21 = arith.constant 0 : index
    %27 = vector.load %arg8[%c0_19, %c0_20, %c0_21] : memref<1x8x32xf32, #tpu.memory_space<vmem>>, vector<1x8x8xf32>
    %28 = vector.shape_cast %27 : vector<1x8x8xf32> to vector<8x8xf32>
    %29 = vector.shape_cast %26 : vector<8x8xf32> to vector<1x8x8xf32>
    tpu.vector_store %arg8[%c0_19, %c0_20, %c0_21], %29 {strides = array<i32>} : memref<1x8x32xf32, #tpu.memory_space<vmem>>, vector<1x8x8xf32>,
    %c0_22 = arith.constant 0 : index
    %c0_23 = arith.constant 0 : index
    %c8 = arith.constant 8 : index
    %30 = vector.load %arg3[%c0_22, %c0_23, %c8] : memref<1x8x32xf32, #tpu.memory_space<vmem>>, vector<1x8x8xf32>
    %31 = vector.shape_cast %30 : vector<1x8x8xf32> to vector<8x8xf32>
    %cst_24 = arith.constant 0.353553385 : f32
    %32 = vector.broadcast %cst_24 : f32 to vector<8x8xf32>
    %33 = arith.mulf %31, %32 : vector<8x8xf32>
    %c0_25 = arith.constant 0 : index
    %c0_26 = arith.constant 0 : index
    %c8_27 = arith.constant 8 : index
    %34 = vector.load %arg4[%c0_25, %c0_26, %c8_27] : memref<1x8x32xf32, #tpu.memory_space<vmem>>, vector<1x8x8xf32>
    %35 = vector.shape_cast %34 : vector<1x8x8xf32> to vector<8x8xf32>
    %c0_28 = arith.constant 0 : index
    %c0_29 = arith.constant 0 : index
    %c8_30 = arith.constant 8 : index
    %36 = vector.load %arg5[%c0_28, %c0_29, %c8_30] : memref<1x8x32xf32, #tpu.memory_space<vmem>>, vector<1x8x8xf32>
    %37 = vector.shape_cast %36 : vector<1x8x8xf32> to vector<8x8xf32>
    %cst_31 = arith.constant dense<0.000000e+00> : vector<8x8xf32>
    %38 = tpu.matmul %33, %35, %cst_31 {dimension_numbers = #tpu.dot_dimension_numbers<[1], [1], [0], [0], [0, 0, 1, 0], [], []>} : vector<8x8xf32>, vector<8x8xf32>, vector<8x8xf32> -> vector<8x8xf32>
    %39 = arith.addf %38, %5 : vector<8x8xf32>
    %cst_32 = arith.constant dense<0xFF800000> : vector<8xf32>
    %40 = vector.multi_reduction <maximumf>, %39, %cst_32 [1] : vector<8x8xf32> to vector<8xf32>
    %41 = vector.shape_cast %40 : vector<8xf32> to vector<8x1xf32>
    %42 = vector.broadcast %41 : vector<8x1xf32> to vector<8x8xf32>
    %43 = arith.subf %39, %42 : vector<8x8xf32>
    %44 = math.exp %43 : vector<8x8xf32>
    %cst_33 = arith.constant dense<0.000000e+00> : vector<8xf32>
    %45 = vector.multi_reduction <add>, %44, %cst_33 [1] : vector<8x8xf32> to vector<8xf32>
    %46 = vector.shape_cast %45 : vector<8xf32> to vector<8x1xf32>
    %47 = tpu.reciprocal %46 {approx = true} : vector<8x1xf32> -> vector<8x1xf32>
    %48 = vector.broadcast %47 : vector<8x1xf32> to vector<8x8xf32>
    %49 = arith.mulf %44, %48 : vector<8x8xf32>
    %cst_34 = arith.constant dense<0.000000e+00> : vector<8x8xf32>
    %50 = tpu.matmul %49, %37, %cst_34 {dimension_numbers = #tpu.dot_dimension_numbers<[1], [0], [0], [1], [0, 0, 1, 1], [], []>} : vector<8x8xf32>, vector<8x8xf32>, vector<8x8xf32> -> vector<8x8xf32>
    %c0_35 = arith.constant 0 : index
    %c0_36 = arith.constant 0 : index
    %c8_37 = arith.constant 8 : index
    %51 = vector.load %arg8[%c0_35, %c0_36, %c8_37] : memref<1x8x32xf32, #tpu.memory_space<vmem>>, vector<1x8x8xf32>
    %52 = vector.shape_cast %51 : vector<1x8x8xf32> to vector<8x8xf32>
    %53 = vector.shape_cast %50 : vector<8x8xf32> to vector<1x8x8xf32>
    tpu.vector_store %arg8[%c0_35, %c0_36, %c8_37], %53 {strides = array<i32>} : memref<1x8x32xf32, #tpu.memory_space<vmem>>, vector<1x8x8xf32>,
    %c0_38 = arith.constant 0 : index
    %c0_39 = arith.constant 0 : index
    %c16 = arith.constant 16 : index
    %54 = vector.load %arg3[%c0_38, %c0_39, %c16] : memref<1x8x32xf32, #tpu.memory_space<vmem>>, vector<1x8x8xf32>
    %55 = vector.shape_cast %54 : vector<1x8x8xf32> to vector<8x8xf32>
    %cst_40 = arith.constant 0.353553385 : f32
    %56 = vector.broadcast %cst_40 : f32 to vector<8x8xf32>
    %57 = arith.mulf %55, %56 : vector<8x8xf32>
    %c0_41 = arith.constant 0 : index
    %c0_42 = arith.constant 0 : index
    %c16_43 = arith.constant 16 : index
    %58 = vector.load %arg4[%c0_41, %c0_42, %c16_43] : memref<1x8x32xf32, #tpu.memory_space<vmem>>, vector<1x8x8xf32>
    %59 = vector.shape_cast %58 : vector<1x8x8xf32> to vector<8x8xf32>
    %c0_44 = arith.constant 0 : index
    %c0_45 = arith.constant 0 : index
    %c16_46 = arith.constant 16 : index
    %60 = vector.load %arg5[%c0_44, %c0_45, %c16_46] : memref<1x8x32xf32, #tpu.memory_space<vmem>>, vector<1x8x8xf32>
    %61 = vector.shape_cast %60 : vector<1x8x8xf32> to vector<8x8xf32>
    %cst_47 = arith.constant dense<0.000000e+00> : vector<8x8xf32>
    %62 = tpu.matmul %57, %59, %cst_47 {dimension_numbers = #tpu.dot_dimension_numbers<[1], [1], [0], [0], [0, 0, 1, 0], [], []>} : vector<8x8xf32>, vector<8x8xf32>, vector<8x8xf32> -> vector<8x8xf32>
    %63 = arith.addf %62, %5 : vector<8x8xf32>
    %cst_48 = arith.constant dense<0xFF800000> : vector<8xf32>
    %64 = vector.multi_reduction <maximumf>, %63, %cst_48 [1] : vector<8x8xf32> to vector<8xf32>
    %65 = vector.shape_cast %64 : vector<8xf32> to vector<8x1xf32>
    %66 = vector.broadcast %65 : vector<8x1xf32> to vector<8x8xf32>
    %67 = arith.subf %63, %66 : vector<8x8xf32>
    %68 = math.exp %67 : vector<8x8xf32>
    %cst_49 = arith.constant dense<0.000000e+00> : vector<8xf32>
    %69 = vector.multi_reduction <add>, %68, %cst_49 [1] : vector<8x8xf32> to vector<8xf32>
    %70 = vector.shape_cast %69 : vector<8xf32> to vector<8x1xf32>
    %71 = tpu.reciprocal %70 {approx = true} : vector<8x1xf32> -> vector<8x1xf32>
    %72 = vector.broadcast %71 : vector<8x1xf32> to vector<8x8xf32>
    %73 = arith.mulf %68, %72 : vector<8x8xf32>
    %cst_50 = arith.constant dense<0.000000e+00> : vector<8x8xf32>
    %74 = tpu.matmul %73, %61, %cst_50 {dimension_numbers = #tpu.dot_dimension_numbers<[1], [0], [0], [1], [0, 0, 1, 1], [], []>} : vector<8x8xf32>, vector<8x8xf32>, vector<8x8xf32> -> vector<8x8xf32>
    %c0_51 = arith.constant 0 : index
    %c0_52 = arith.constant 0 : index
    %c16_53 = arith.constant 16 : index
    %75 = vector.load %arg8[%c0_51, %c0_52, %c16_53] : memref<1x8x32xf32, #tpu.memory_space<vmem>>, vector<1x8x8xf32>
    %76 = vector.shape_cast %75 : vector<1x8x8xf32> to vector<8x8xf32>
    %77 = vector.shape_cast %74 : vector<8x8xf32> to vector<1x8x8xf32>
    tpu.vector_store %arg8[%c0_51, %c0_52, %c16_53], %77 {strides = array<i32>} : memref<1x8x32xf32, #tpu.memory_space<vmem>>, vector<1x8x8xf32>,
    %c0_54 = arith.constant 0 : index
    %c0_55 = arith.constant 0 : index
    %c24 = arith.constant 24 : index
    %78 = vector.load %arg3[%c0_54, %c0_55, %c24] : memref<1x8x32xf32, #tpu.memory_space<vmem>>, vector<1x8x8xf32>
    %79 = vector.shape_cast %78 : vector<1x8x8xf32> to vector<8x8xf32>
    %cst_56 = arith.constant 0.353553385 : f32
    %80 = vector.broadcast %cst_56 : f32 to vector<8x8xf32>
    %81 = arith.mulf %79, %80 : vector<8x8xf32>
    %c0_57 = arith.constant 0 : index
    %c0_58 = arith.constant 0 : index
    %c24_59 = arith.constant 24 : index
    %82 = vector.load %arg4[%c0_57, %c0_58, %c24_59] : memref<1x8x32xf32, #tpu.memory_space<vmem>>, vector<1x8x8xf32>
    %83 = vector.shape_cast %82 : vector<1x8x8xf32> to vector<8x8xf32>
    %c0_60 = arith.constant 0 : index
    %c0_61 = arith.constant 0 : index
    %c24_62 = arith.constant 24 : index
    %84 = vector.load %arg5[%c0_60, %c0_61, %c24_62] : memref<1x8x32xf32, #tpu.memory_space<vmem>>, vector<1x8x8xf32>
    %85 = vector.shape_cast %84 : vector<1x8x8xf32> to vector<8x8xf32>
    %cst_63 = arith.constant dense<0.000000e+00> : vector<8x8xf32>
    %86 = tpu.matmul %81, %83, %cst_63 {dimension_numbers = #tpu.dot_dimension_numbers<[1], [1], [0], [0], [0, 0, 1, 0], [], []>} : vector<8x8xf32>, vector<8x8xf32>, vector<8x8xf32> -> vector<8x8xf32>
    %87 = arith.addf %86, %5 : vector<8x8xf32>
    %cst_64 = arith.constant dense<0xFF800000> : vector<8xf32>
    %88 = vector.multi_reduction <maximumf>, %87, %cst_64 [1] : vector<8x8xf32> to vector<8xf32>
    %89 = vector.shape_cast %88 : vector<8xf32> to vector<8x1xf32>
    %90 = vector.broadcast %89 : vector<8x1xf32> to vector<8x8xf32>
    %91 = arith.subf %87, %90 : vector<8x8xf32>
    %92 = math.exp %91 : vector<8x8xf32>
    %cst_65 = arith.constant dense<0.000000e+00> : vector<8xf32>
    %93 = vector.multi_reduction <add>, %92, %cst_65 [1] : vector<8x8xf32> to vector<8xf32>
    %94 = vector.shape_cast %93 : vector<8xf32> to vector<8x1xf32>
    %95 = tpu.reciprocal %94 {approx = true} : vector<8x1xf32> -> vector<8x1xf32>
    %96 = vector.broadcast %95 : vector<8x1xf32> to vector<8x8xf32>
    %97 = arith.mulf %92, %96 : vector<8x8xf32>
    %cst_66 = arith.constant dense<0.000000e+00> : vector<8x8xf32>
    %98 = tpu.matmul %97, %85, %cst_66 {dimension_numbers = #tpu.dot_dimension_numbers<[1], [0], [0], [1], [0, 0, 1, 1], [], []>} : vector<8x8xf32>, vector<8x8xf32>, vector<8x8xf32> -> vector<8x8xf32>
    %c0_67 = arith.constant 0 : index
    %c0_68 = arith.constant 0 : index
    %c24_69 = arith.constant 24 : index
    %99 = vector.load %arg8[%c0_67, %c0_68, %c24_69] : memref<1x8x32xf32, #tpu.memory_space<vmem>>, vector<1x8x8xf32>
    %100 = vector.shape_cast %99 : vector<1x8x8xf32> to vector<8x8xf32>
    %101 = vector.shape_cast %98 : vector<8x8xf32> to vector<1x8x8xf32>
    tpu.vector_store %arg8[%c0_67, %c0_68, %c24_69], %101 {strides = array<i32>} : memref<1x8x32xf32, #tpu.memory_space<vmem>>, vector<1x8x8xf32>,
    return
  }
  func.func @transform_0(%arg0: i32, %arg1: i32, %arg2: i32) -> (i32, i32, i32) {
    %c0_i32 = arith.constant 0 : i32
    return %arg0, %arg2, %arg1 : i32, i32, i32
  }
  func.func @transform_1(%arg0: i32, %arg1: i32, %arg2: i32) -> (i32, i32, i32) {
    %c0_i32 = arith.constant 0 : i32
    %c0_i32_0 = arith.constant 0 : i32
    return %arg0, %c0_i32, %arg1 : i32, i32, i32
  }
  func.func @transform_2(%arg0: i32, %arg1: i32, %arg2: i32) -> (i32, i32, i32) {
    %c0_i32 = arith.constant 0 : i32
    %c0_i32_0 = arith.constant 0 : i32
    return %arg0, %c0_i32, %arg1 : i32, i32, i32
  }
  func.func @transform_3(%arg0: i32, %arg1: i32, %arg2: i32) -> (i32, i32, i32) {
    %c0_i32 = arith.constant 0 : i32
    %c0_i32_0 = arith.constant 0 : i32
    return %arg0, %arg2, %c0_i32 : i32, i32, i32
  }
  func.func @transform_4(%arg0: i32, %arg1: i32, %arg2: i32) -> (i32, i32) {
    %c0_i32 = arith.constant 0 : i32
    %c0_i32_0 = arith.constant 0 : i32
    %c0_i32_1 = arith.constant 0 : i32
    return %c0_i32, %c0_i32_0 : i32, i32
  }
  func.func @transform_5(%arg0: i32, %arg1: i32, %arg2: i32) -> (i32, i32, i32) {
    %c0_i32 = arith.constant 0 : i32
    return %arg0, %arg2, %arg1 : i32, i32, i32
  }
}

</mosaic_0001>

<bundles_post_ra>
// kernel: _lambda_.7
= control target key start
LH: loop header
LB: loop body
LE: loop exit
PB: predicated region body
PF: predicated region fallthrough
CT: control target
= control target key end

     0   :  { %vm29_vm0 = vcmask 130048   ;;  %vm18_vm1 = vcmask 261120   ;;  %v185_v2 = vmov 0.0   ;;  %s243_s1 = inlined_call_operand.vmem [shape: f32[32,16], index: 1, kind: input, shape index: {}]   ;;  %s244_s0 = inlined_call_operand.vmem [shape: f32[16,16], index: 0, kind: input, shape index: {}]   ;;  %s245_s2 = inlined_call_operand.vmem [shape: f32[1,32], index: 2, kind: input, shape index: {}]   ;;  %s246_s3 = inlined_call_operand.vmem [shape: f32[16,32], index: 3, kind: output, shape index: {}]  }
   0x1   :  { %v23_v0 = vld [vmem:[%s243_s1] sm:$0xff]  ;;  %v24_v1 = vld [vmem:[%s243_s1 + $0x8] sm:$0xff]  ;;  %vm173_vm2 = vmpackc.low %vm29_vm0, %vm29_vm0  ;;  %20 = vst.msk [vmem:[#allocation2 + $0x8] sm:$0xff] %vm18_vm1, %v185_v2 }
   0x2   :  { %19 = vst.msk [vmem:[#allocation2] sm:$0xff] %vm18_vm1, %v185_v2  ;;  %v172_v3 = vpack.c.bf16 %v24_v1, %v23_v0  ;;  %v25_v4 = vld [vmem:[%s243_s1 + $0x10] sm:$0xff]  ;;  %v26_v5 = vld [vmem:[%s243_s1 + $0x18] sm:$0xff]  ;;  %v21_v6 = vld [vmem:[%s244_s0] sm:$0xff] }
   0x3   :  { %v178_v7 = vpack.c.bf16 %v26_v5, %v25_v4  ;;  %169 = vmatprep.mubr.msk.f32.mxu0 %vm29_vm0, %v21_v6  ;;  %v22_v8 = vld [vmem:[%s244_s0 + $0x8] sm:$0xff]  ;;  %v154_v15 = vld [vmem:[%s245_s2] ss:$0 sm:$0xff] }
   0x4   :  { %174 = vmatprep.subr.msk.bf16.mxu0 %vm173_vm2, %v172_v3 }
   0x5   :  { %177 = vmatpush3.bf16.xpose.msk.msra.mxu0 %vm173_vm2, %v172_v3 }
   0x6   :  { %180 = vmatprep.subr.msk.bf16.mxu0 %vm173_vm2, %v178_v7 }
   0x8   :  { %v28_v9 = vld [vmem:[#allocation2 + $0x8] sm:$0xff] }
   0x9   :  { %v27_v10 = vld [vmem:[#allocation2] sm:$0xff] }
   0xd   :  { %183 = vmatpush3.bf16.xpose.msk.msra.mxu0 %vm173_vm2, %v178_v7 }
  0x14   :  { %170 = vmatmul.mubr.msk.f32.vlgmr.msra.gmra.mrb[0].mxu0 %vm29_vm0, %v22_v8 }
  0xe7   :  { %v171_v11 = vpop.f32.mrb[0].mxu0 }
  0xe8   :  { %v124_v12 = vadd.f32 %v171_v11, %v28_v9  ;;  %v114_v13 = vpop.f32.mrb[1].mxu0 }
  0xe9   :  { %v123_v14 = vadd.f32 %v114_v13, %v27_v10 }
  0xea   :  { %127 = vst.msk [vmem:[#allocation2 + $0x8] sm:$0xff] %vm18_vm1, %v124_v12 }
  0xeb   :  { %126 = vst.msk [vmem:[#allocation2] sm:$0xff] %vm18_vm1, %v123_v14 }
  0xf1   :  { %v132_v16 = vld [vmem:[#allocation2 + $0x8] sm:$0xff] }
  0xf2   :  { %v141_v17 = vadd.f32 %v154_v15, %v132_v16  ;;  %v131_v18 = vld [vmem:[#allocation2] sm:$0xff] }
  0xf3   :  { %v140_v19 = vadd.f32 %v154_v15, %v131_v18 }
  0xf4   :  { %143 = vst.msk [vmem:[%s246_s3 + $0x8] sm:$0xff] %vm18_vm1, %v141_v17 }
  0xf5   :  { %142 = vst.msk [vmem:[%s246_s3] sm:$0xff] %vm18_vm1, %v140_v19 }

// kernel: _lambda_.5
= control target key start
LH: loop header
LB: loop body
LE: loop exit
PB: predicated region body
PF: predicated region fallthrough
CT: control target
= control target key end

     0   :  { %vm18_vm0 = vcmask 261120   ;;  %v184_v2 = vmov 0.0   ;;  %s242_s1 = inlined_call_operand.vmem [shape: f32[32,32], index: 1, kind: input, shape index: {}]   ;;  %s243_s0 = inlined_call_operand.vmem [shape: f32[16,32], index: 0, kind: input, shape index: {}]   ;;  %s244_s2 = inlined_call_operand.vmem [shape: f32[1,32], index: 2, kind: input, shape index: {}]   ;;  %s245_s3 = inlined_call_operand.vmem [shape: f32[16,32], index: 3, kind: output, shape index: {}]  }
   0x1   :  { %v23_v0 = vld [vmem:[%s242_s1] sm:$0xff]  ;;  %v24_v1 = vld [vmem:[%s242_s1 + $0x8] sm:$0xff]  ;;  %vm172_vm1 = vmpackc.low %vm18_vm0, %vm18_vm0  ;;  %20 = vst.msk [vmem:[#allocation2 + $0x8] sm:$0xff] %vm18_vm0, %v184_v2 }
   0x2   :  { %19 = vst.msk [vmem:[#allocation2] sm:$0xff] %vm18_vm0, %v184_v2  ;;  %v171_v3 = vpack.c.bf16 %v24_v1, %v23_v0  ;;  %v25_v4 = vld [vmem:[%s242_s1 + $0x10] sm:$0xff]  ;;  %v26_v5 = vld [vmem:[%s242_s1 + $0x18] sm:$0xff]  ;;  %v21_v6 = vld [vmem:[%s243_s0] sm:$0xff] }
   0x3   :  { %v177_v7 = vpack.c.bf16 %v26_v5, %v25_v4  ;;  %168 = vmatprep.mubr.msk.f32.mxu0 %vm18_vm0, %v21_v6  ;;  %v22_v8 = vld [vmem:[%s243_s0 + $0x8] sm:$0xff]  ;;  %v153_v15 = vld [vmem:[%s244_s2] ss:$0 sm:$0xff] }
   0x4   :  { %173 = vmatprep.subr.msk.bf16.mxu0 %vm172_vm1, %v171_v3 }
   0x5   :  { %176 = vmatpush3.bf16.xpose.msk.msra.mxu0 %vm172_vm1, %v171_v3 }
   0x6   :  { %179 = vmatprep.subr.msk.bf16.mxu0 %vm172_vm1, %v177_v7 }
   0x8   :  { %v28_v9 = vld [vmem:[#allocation2 + $0x8] sm:$0xff] }
   0x9   :  { %v27_v10 = vld [vmem:[#allocation2] sm:$0xff] }
   0xd   :  { %182 = vmatpush3.bf16.xpose.msk.msra.mxu0 %vm172_vm1, %v177_v7 }
  0x14   :  { %169 = vmatmul.mubr.msk.f32.vlgmr.msra.gmra.mrb[0].mxu0 %vm18_vm0, %v22_v8 }
  0xe7   :  { %v170_v11 = vpop.f32.mrb[0].mxu0 }
  0xe8   :  { %v124_v12 = vadd.f32 %v170_v11, %v28_v9  ;;  %v114_v13 = vpop.f32.mrb[1].mxu0 }
  0xe9   :  { %v123_v14 = vadd.f32 %v114_v13, %v27_v10 }
  0xea   :  { %126 = vst.msk [vmem:[#allocation2 + $0x8] sm:$0xff] %vm18_vm0, %v124_v12 }
  0xeb   :  { %125 = vst.msk [vmem:[#allocation2] sm:$0xff] %vm18_vm0, %v123_v14 }
  0xf1   :  { %v131_v16 = vld [vmem:[#allocation2 + $0x8] sm:$0xff] }
  0xf2   :  { %v140_v17 = vadd.f32 %v153_v15, %v131_v16  ;;  %v130_v18 = vld [vmem:[#allocation2] sm:$0xff] }
  0xf3   :  { %v139_v19 = vadd.f32 %v153_v15, %v130_v18 }
  0xf4   :  { %142 = vst.msk [vmem:[%s245_s3 + $0x8] sm:$0xff] %vm18_vm0, %v140_v17 }
  0xf5   :  { %141 = vst.msk [vmem:[%s245_s3] sm:$0xff] %vm18_vm0, %v139_v19 }

// kernel: _lambda_.8
= control target key start
LH: loop header
LB: loop body
LE: loop exit
PB: predicated region body
PF: predicated region fallthrough
CT: control target
= control target key end

     0   :  { %s1474_s18 = smov 0   ;;  %s1476_s19 = smov 0   ;;  %s1585_s0 = inlined_call_operand.vmem [shape: f32[2,8,32], index: 0, kind: input, shape index: {}]   ;;  %s1586_s1 = inlined_call_operand.vmem [shape: f32[2,8,32], index: 1, kind: input, shape index: {}]   ;;  %s1587_s2 = inlined_call_operand.vmem [shape: f32[2,8,32], index: 2, kind: input, shape index: {}]   ;;  %s1588_s3 = inlined_call_operand.vmem [shape: f32[2,8,8], index: 3, kind: input, shape index: {}]   ;;  %s1589_s4 = inlined_call_operand.vmem [shape: f32[8,8], index: 4, kind: input, shape index: {}]   ;;  %s1590_s5 = inlined_call_operand.vmem [shape: f32[2,8,32], index: 5, kind: output, shape index: {}]  }
   0x1   :  { %s1478_s20 = smov 0  }
   0x2 LB: > { %s34_s21 = sadd.s32 1, %s1430_s19  ;;  %p1279_p0 = scmp.ge.s32.totalorder %s1434_s20, 1  ;;  %s1434_s20 = sphi %s1478_s20, %s15_s20   ;;  %s1430_s19 = sphi %s1476_s19, %s1592_s19   ;;  %s1426_s18 = sphi %s1474_s18, %s1591_s18  }
   0x3   : > { %p36_p1 = scmp.ge.s32.totalorder %s34_s21, 2  ;;  %p261_p2 = scmp.lt.s32.totalorder %s1434_s20, 3 }
   0x5   : > { %s1594_s21 = smov (%p36_p1, %s34_s21), 0  ;;  %p262_p3 = pnand %p1279_p0, %p261_p2 }
   0x6   : > { %v362_v0 = vld [vmem:[%s1589_s4] sm:$0xff] (!%p262_p3)  ;;  %vm363_vm0 = vcmask (!%p262_p3), 64512   ;;  %p320_p4 = scmp.lt.s32.totalorder (!%p262_p3), %s1426_s18, 1  ;;  %v1436_v1 = vmov (!%p262_p3), 0.0   ;;  %vm1437_vm1 = vmmov (!%p262_p3), 0   ;;  %s1438_s9 = smov (!%p262_p3), 120  }
   0x7   : > { %265 = sbr.rel (%p262_p3) target bundleno = 1001 (0x3e9), region = 40  ;;  %1319 = vmatprep.subr.mxu0 (!%p262_p3), %v1436_v1  ;;  %1324 = vmatprep.subr.mxu1 (!%p262_p3), %v1436_v1  ;;  %s1439_s10 = smov (!%p262_p3), 112   ;;  %vm782_vm2 = vcmask (!%p262_p3), 130112   ;;  %vm960_vm3 = vcmask (!%p262_p3), 195712   ;;  %vm1138_vm4 = vcmask (!%p262_p3), 261312  }
   0x8   : > { %1320 = vmatpush3.xpose.msk.msra.mxu0 (!%p262_p3), %vm363_vm0, %v362_v0  ;;  %1321 = vmatprep.mubr.msk.f32.mxu0 (!%p262_p3), %vm1437_vm1, %v1436_v1  ;;  %s1440_s11 = smov (!%p262_p3), 104   ;;  %s1442_s22 = smov (!%p262_p3), 16  }
   0x9   : > { %1326 = vmatprep.mubr.msk.f32.mxu1 (!%p262_p3), %vm1437_vm1, %v1436_v1  ;;  %1329 = vmatprep.subr.mxu0 (!%p262_p3), %v1436_v1  ;;  %s1443_s23 = smov (!%p262_p3), 24  }
   0xe   : > { %s1596_s18 = smov (!%p320_p4, %s1426_s18), 1 }
   0xf   : > { %s1503_s24 = sshll.u32 %s1596_s18, 3  ;;  %s1441_s18 = smov 8  }
  0x10   : > { %s336_s27 = scalar_lea.vmem %s1586_s1, %s1503_s24  ;;  %s350_s30 = scalar_lea.vmem %s1588_s3, %s1503_s24 }
  0x11   : > { %v608_v2 = vld [vmem:[%s336_s27] sm:$0xff]  ;;  %s329_s8 = scalar_lea.vmem %s1585_s0, %s1503_s24  ;;  %s343_s14 = scalar_lea.vmem %s1587_s2, %s1503_s24 }
  0x12   : > { %v361_v3 = vld [vmem:[%s350_s30] sm:$0xff]  ;;  %614 = vrot.lane.b32.xlu0 %v608_v2, %s1438_s9  ;;  %1325 = vmatpush3.xpose.msk.msra.mxu1 %vm363_vm0, %v608_v2  ;;  %s360_s17 = scalar_lea.vmem %s1590_s5, %s1503_s24 }
  0x13   : > { %v441_v4 = vld [vmem:[%s329_s8] sm:$0xff]  ;;  %1322 = vmatmul.mubr.msk.f32.vlgmr.msra.gmra.mrb[0].mxu0 %vm363_vm0, %v361_v3  ;;  %792 = vrot.lane.b32.xlu1 %v608_v2, %s1439_s10 }
  0x14   : > { %v442_v5 = vmul.f32 0.35355338, %v441_v4  ;;  %1334 = vmatprep.subr.mxu1 %v1436_v1  ;;  %1331 = vmatprep.mubr.msk.f32.mxu0 %vm1437_vm1, %v1436_v1  ;;  %v609_v18 = vld [vmem:[%s343_s14] sm:$0xff] }
  0x15   : > { %1330 = vmatpush3.msra.mxu0 %v609_v18 }
  0x16   : > { %1327 = vmatmul.mubr.msk.f32.vlgmr.msra.gmra.mrb[0].mxu1 %vm363_vm0, %v442_v5  ;;  %611 = vrot.lane.b32.xlu0 %v442_v5, %s1438_s9 }
  0x17   : > { %1336 = vmatprep.mubr.msk.f32.mxu1 %vm1437_vm1, %v1436_v1  ;;  %789 = vrot.lane.b32.xlu1 %v442_v5, %s1439_s10 }
  0x18   : > { %1339 = vmatprep.subr.mxu0 %v1436_v1 }
  0x1a   : > { %970 = vrot.lane.b32.xlu0 %v608_v2, %s1440_s11 }
  0x1b   : > { %967 = vrot.lane.b32.xlu1 %v442_v5, %s1440_s11 }
  0x84   : > { %v615_v6 = vpop.permute.xlu0 %614 }
  0x85   : > { %1335 = vmatpush3.xpose.msk.msra.mxu1 %vm363_vm0, %v615_v6  ;;  %v793_v7 = vpop.permute.xlu1 %792 }
  0x86   : > { %1344 = vmatprep.subr.mxu1 %v1436_v1 }
  0x88   : > { %v612_v8 = vpop.permute.xlu0 %611 }
  0x89   : > { %1337 = vmatmul.mubr.msk.f32.vlgmr.msra.gmra.mrb[2].mxu1 %vm363_vm0, %v612_v8  ;;  %v790_v9 = vpop.permute.xlu1 %789 }
  0x8a   : > { %1345 = vmatpush3.xpose.msk.msra.mxu1 %vm363_vm0, %v793_v7  ;;  %1346 = vmatprep.mubr.msk.f32.mxu1 %vm1437_vm1, %v1436_v1 }
  0x8b   : > { %1354 = vmatprep.subr.mxu1 %v1436_v1 }
  0x8c   : > { %v971_v10 = vpop.permute.xlu0 %970 }
  0x8d   : > { %1347 = vmatmul.mubr.msk.f32.vlgmr.msra.gmra.mrb[4].mxu1 %vm363_vm0, %v790_v9  ;;  %v968_v11 = vpop.permute.xlu1 %967 }
  0x8e   : > { %1355 = vmatpush3.xpose.msk.msra.mxu1 %vm363_vm0, %v971_v10  ;;  %1356 = vmatprep.mubr.msk.f32.mxu1 %vm1437_vm1, %v1436_v1 }
  0x91   : > { %1357 = vmatmul.mubr.msk.f32.vlgmr.msra.gmra.mrb[6].mxu1 %vm363_vm0, %v968_v11 }
  0xe6   : > { %v436_v12 = vpop.f32.mrb[0].mxu0 }
  0xe7   : > { %v440_v13 = vmul.f32 0.35355338, %v436_v12  ;;  %v1323_v14 = vpop.f32.mrb[1].mxu0 }
  0xe9   : > { %v517_v15 = vpop.f32.mrb[0].mxu1 }
  0xea   : > { %v518_v16 = vadd.f32 %v517_v15, %v440_v13  ;;  %v1328_v17 = vpop.f32.mrb[1].mxu1 }
  0xec   : > { %v521_v19 = vsel %vm363_vm0, %v518_v16, -inf }
  0xed   : > { %522 = vmax.xlane.f32.xlu0 %v521_v19 }
 0x15c   : > { %v686_v20 = vpop.f32.mrb[2].mxu1 }
 0x15d   : > { %v687_v21 = vadd.f32 %v686_v20, %v440_v13  ;;  %v1338_v22 = vpop.f32.mrb[3].mxu1 }
 0x15f   : > { %v690_v23 = vsel %vm363_vm0, %v687_v21, -inf }
 0x160   : > { %691 = vmax.xlane.f32.xlu1 %v690_v23  ;;  %v864_v24 = vpop.f32.mrb[4].mxu1 }
 0x161   : > { %v865_v25 = vadd.f32 %v864_v24, %v440_v13  ;;  %v1348_v26 = vpop.f32.mrb[5].mxu1 }
 0x163   : > { %v868_v27 = vsel %vm363_vm0, %v865_v25, -inf }
 0x164   : > { %869 = vmax.xlane.f32.xlu0 %v868_v27  ;;  %v1042_v28 = vpop.f32.mrb[6].mxu1 }
 0x165   : > { %v1043_v29 = vadd.f32 %v1042_v28, %v440_v13  ;;  %v1358_v30 = vpop.f32.mrb[7].mxu1 }
 0x167   : > { %v1046_v31 = vsel %vm363_vm0, %v1043_v29, -inf }
 0x168   : > { %1047 = vmax.xlane.f32.xlu0 %v1046_v31 }
 0x171   : > { %702 = vrot.lane.b32.xlu1 %v609_v18, %s1438_s9 }
 0x17a   : > { %v523_v32 = vpop.xlane.xlu0 %522 }
 0x17b   : > { %v524_v33 = vsub.f32 %v518_v16, %v523_v32 }
 0x17d   : > { %v525_v34 = vmul.f32 1.442695, %v524_v33 }
 0x17f   : > { %1396 = vpow2.f32 %v525_v34 }
 0x189   : > { %v1397_v35 = vpop.eup %1396 }
 0x18a   : > { %v527_v36 = vsel %vm363_vm0, %v1397_v35, 0.0 }
 0x195   : > { %528 = vadd.xlane.f32.xlu1 %v527_v36 }
 0x1ed   : > { %v692_v37 = vpop.xlane.xlu1 %691 }
 0x1ee   : > { %v693_v38 = vsub.f32 %v687_v21, %v692_v37 }
 0x1f0   : > { %v694_v39 = vmul.f32 1.442695, %v693_v38 }
 0x1f1   : > { %v870_v40 = vpop.xlane.xlu0 %869  ;;  %v703_v52 = vpop.permute.xlu1 %702 }
 0x1f2   : > { %1398 = vpow2.f32 %v694_v39  ;;  %v871_v41 = vsub.f32 %v865_v25, %v870_v40 }
 0x1f4   : > { %v872_v42 = vmul.f32 1.442695, %v871_v41 }
 0x1f5   : > { %v1048_v43 = vpop.xlane.xlu0 %1047 }
 0x1f6   : > { %1400 = vpow2.f32 %v872_v42  ;;  %v1049_v44 = vsub.f32 %v1043_v29, %v1048_v43 }
 0x1f8   : > { %v1050_v45 = vmul.f32 1.442695, %v1049_v44 }
 0x1fa   : > { %1402 = vpow2.f32 %v1050_v45 }
 0x1fc   : > { %v1399_v46 = vpop.eup %1398 }
 0x1fd   : > { %v696_v47 = vsel %vm363_vm0, %v1399_v46, 0.0 }
 0x1fe   : > { %697 = vadd.xlane.f32.xlu0 %v696_v47 }
 0x200   : > { %v1401_v48 = vpop.eup %1400 }
 0x201   : > { %v874_v49 = vsel %vm363_vm0, %v1401_v48, 0.0 }
 0x202   : > { %875 = vadd.xlane.f32.xlu1 %v874_v49 }
 0x204   : > { %v1403_v50 = vpop.eup %1402 }
 0x205   : > { %v1052_v51 = vsel %vm363_vm0, %v1403_v50, 0.0 }
 0x206   : > { %1053 = vadd.xlane.f32.xlu0 %v1052_v51 }
 0x213   : > { %1058 = vrot.lane.b32.xlu1 %v609_v18, %s1440_s11 }
 0x21c   : > { %880 = vrot.lane.b32.xlu0 %v609_v18, %s1439_s10 }
 0x222   : > { %v529_v53 = vpop.xlane.xlu1 %528 }
 0x223   : > { %1404 = vrcp.f32 %v529_v53 }
 0x22d   : > { %v1405_v54 = vpop.eup %1404 }
 0x22e   : > { %v531_v55 = vmul.f32 %v1405_v54, %v1397_v35 }
 0x230   : > { %1332 = vmatmul.mubr.msk.f32.vlgmr.msra.gmra.mrb[2].mxu0 %vm363_vm0, %v531_v55 }
 0x231   : > { %1340 = vmatpush3.msra.mxu0 %v703_v52  ;;  %1341 = vmatprep.mubr.msk.f32.mxu0 %vm1437_vm1, %v1436_v1 }
 0x232   : > { %1349 = vmatprep.subr.mxu0 %v1436_v1 }
 0x28b   : > { %v698_v56 = vpop.xlane.xlu0 %697 }
 0x28c   : > { %1406 = vrcp.f32 %v698_v56 }
 0x28f   : > { %v876_v57 = vpop.xlane.xlu1 %875 }
 0x290   : > { %1408 = vrcp.f32 %v876_v57 }
 0x293   : > { %v1054_v58 = vpop.xlane.xlu0 %1053  ;;  %v1059_v0 = vpop.permute.xlu1 %1058 }
 0x294   : > { %1410 = vrcp.f32 %v1054_v58 }
 0x296   : > { %v1407_v59 = vpop.eup %1406 }
 0x297   : > { %v700_v60 = vmul.f32 %v1407_v59, %v1399_v46  ;;  %v881_v61 = vpop.permute.xlu0 %880 }
 0x299   : > { %1342 = vmatmul.mubr.msk.f32.vlgmr.msra.gmra.mrb[4].mxu0 %vm363_vm0, %v700_v60 }
 0x29a   : > { %v1409_v62 = vpop.eup %1408  ;;  %1350 = vmatpush3.msra.mxu0 %v881_v61  ;;  %1351 = vmatprep.mubr.msk.f32.mxu0 %vm1437_vm1, %v1436_v1 }
 0x29b   : > { %v878_v63 = vmul.f32 %v1409_v62, %v1401_v48  ;;  %1359 = vmatprep.subr.mxu0 %v1436_v1 }
 0x29d   : > { %1352 = vmatmul.mubr.msk.f32.vlgmr.msra.gmra.mrb[6].mxu0 %vm363_vm0, %v878_v63 }
 0x29e   : > { %v1411_v2 = vpop.eup %1410  ;;  %1360 = vmatpush3.msra.mxu0 %v1059_v0  ;;  %1361 = vmatprep.mubr.msk.f32.mxu0 %vm1437_vm1, %v1436_v1 }
 0x29f   : > { %v1056_v3 = vmul.f32 %v1411_v2, %v1403_v50 }
 0x2a1   : > { %1362 = vmatmul.mubr.msk.f32.vlgmr.msra.gmra.mrb[8].mxu0 %vm363_vm0, %v1056_v3 }
 0x303   : > { %v601_v4 = vpop.f32.mrb[2].mxu0 }
 0x304   : > { %605 = vst.msk [vmem:[%s360_s17] sm:$0xff] %vm363_vm0, %v601_v4  ;;  %v1333_v5 = vpop.f32.mrb[3].mxu0 }
 0x36c   : > { %v774_v6 = vpop.f32.mrb[4].mxu0 }
 0x36d   : > { %779 = vrot.lane.b32.xlu1 %v774_v6, %s1441_s18  ;;  %v1343_v7 = vpop.f32.mrb[5].mxu0 }
 0x370   : > { %v952_v8 = vpop.f32.mrb[6].mxu0 }
 0x371   : > { %957 = vrot.lane.b32.xlu0 %v952_v8, %s1442_s22  ;;  %v1353_v9 = vpop.f32.mrb[7].mxu0 }
 0x374   : > { %v1130_v1 = vpop.f32.mrb[8].mxu0 }
 0x375   : > { %1135 = vrot.lane.b32.xlu1 %v1130_v1, %s1443_s23  ;;  %v1363_v10 = vpop.f32.mrb[9].mxu0 }
 0x3df   : > { %v780_v11 = vpop.permute.xlu1 %779 }
 0x3e0   : > { %783 = vst.msk [vmem:[%s360_s17] sm:$0xff] %vm782_vm2, %v780_v11 }
 0x3e3   : > { %v958_v12 = vpop.permute.xlu0 %957 }
 0x3e4   : > { %961 = vst.msk [vmem:[%s360_s17] sm:$0xff] %vm960_vm3, %v958_v12 }
 0x3e7   : > { %v1136_v13 = vpop.permute.xlu1 %1135 }
 0x3e8   : > { %1139 = vst.msk [vmem:[%s360_s17] sm:$0xff] %vm1138_vm4, %v1136_v13 }
 0x3e9 PF: > { %s15_s20 = sadd.s32 1, %s1434_s20   ;;  %s1591_s18 = smov %s1430_s19 }
 0x3ea   : > { %p12_p5 = scmp.ge.s32.totalorder %s15_s20, 4   ;;  %s1592_s19 = smov %s1594_s21 }
 0x3ec   :  { %14 = sbr.rel (!%p12_p5) target bundleno = 2 (0x2), region = 79 }

</bundles_post_ra>
